<compile_context>
chip_gen: v7x
topology: tpu7x:2x2x1
jax: 0.10.0
libtpu: 0.0.40
codegen_flags: <defaults>
</compile_context>

<pallas_src>
import functools

import jax
import jax.numpy as jnp
from jax import lax
from jax.experimental import pallas as pl
from jax.experimental.pallas import tpu as pltpu

HIDDEN = 20
NEG_SLOPE = 0.1
DEFAULT_BLOCK_BATCH = 16384  # ~1 MiB of f32 x per block; well under VMEM on all gens


def _leaky_relu(v):
    # max(v, a*v) == LeakyReLU(a)(v) for 0 < a < 1  (mul+max, 2 VALU ops/vreg)
    return jnp.maximum(v, NEG_SLOPE * v)


def _mlp_kernel(x_ref, w1_ref, w23_ref, w4_ref, b_ref, o_ref):
    # x_ref  : [TB, state_size]     (natural input layout, no host transpose)
    # w1_ref : [HIDDEN, state_size]
    # w23_ref: [2, HIDDEN, HIDDEN]  (layer2 / layer3 stacked)
    # w4_ref : [action_size, HIDDEN]
    # b_ref  : [max_out, 4]         (bias of layer j in column j, zero padded)
    # o_ref  : [action_size, TB]    (batch on lanes -> lane-dense stores)
    action_size = o_ref.shape[0]

    x = x_ref[...]
    w1 = w1_ref[...]
    w2 = w23_ref[0]
    w3 = w23_ref[1]
    w4 = w4_ref[...]

    b1 = b_ref[0:HIDDEN, 0:1]
    b2 = b_ref[0:HIDDEN, 1:2]
    b3 = b_ref[0:HIDDEN, 2:3]
    b4 = b_ref[0:action_size, 3:4]

    # Layer 1: contract the state_size dim of BOTH operands -> [HIDDEN, TB].
    # The "transpose" of x happens on the MXU feed, not on the host.
    h1 = _leaky_relu(
        lax.dot_general(w1, x, (((1,), (1,)), ((), ())),
                        preferred_element_type=jnp.float32) + b1)
    h2 = _leaky_relu(jnp.dot(w2, h1, preferred_element_type=jnp.float32) + b2)
    h3 = _leaky_relu(jnp.dot(w3, h2, preferred_element_type=jnp.float32) + b3)
    out = jnp.dot(w4, h3, preferred_element_type=jnp.float32) + b4
    o_ref[...] = out.astype(o_ref.dtype)


def pack_params(params):
    """One-time packing of the PyTorch-layout params (hoisted out of forward)."""
    action_size = params["w4"].shape[0]
    max_out = max(HIDDEN, action_size)

    def _pad_b(b):
        return jnp.pad(b, (0, max_out - b.shape[0]))

    b_packed = jnp.stack(
        [_pad_b(params["b1"]), _pad_b(params["b2"]),
         _pad_b(params["b3"]), _pad_b(params["b4"])], axis=1)  # [max_out, 4]
    return {
        "w1": params["w1"],                              # [HIDDEN, state_size]
        "w23": jnp.stack([params["w2"], params["w3"]]),  # [2, HIDDEN, HIDDEN]
        "w4": params["w4"],                              # [action_size, HIDDEN]
        "b": b_packed,                                   # [max_out, 4]
    }


def _choose_tb(batch, block_batch):
    if batch <= block_batch:
        return batch                      # single block, full-extent dims OK
    tb = min(block_batch, -(-batch // 4))  # keep >= 4 blocks (2 per v7x TC)
    tb = max(128, (tb // 128) * 128)       # lane/sublane alignment for partial blocks
    return tb


@functools.partial(jax.jit, static_argnames=("block_batch",))
def mlp_forward(x, packed, *, block_batch=DEFAULT_BLOCK_BATCH):
    """x: [batch, state_size] float32; packed: output of pack_params()."""
    batch, state_size = x.shape
    action_size = packed["w4"].shape[0]
    max_out = packed["b"].shape[0]

    tb = _choose_tb(batch, block_batch)
    grid = (pl.cdiv(batch, tb),)  # ragged tail handled by Pallas boundary masking

    out_t = pl.pallas_call(
        _mlp_kernel,
        out_shape=jax.ShapeDtypeStruct((action_size, batch), jnp.float32),
        grid_spec=pltpu.PrefetchScalarGridSpec(
            num_scalar_prefetch=0,
            grid=grid,
            in_specs=[
                # activations: one batch block per grid step, natural layout
                pl.BlockSpec((tb, state_size), lambda i: (i, 0)),
                # weights / biases: resident across all grid steps
                pl.BlockSpec((HIDDEN, state_size), lambda i: (0, 0)),
                pl.BlockSpec((2, HIDDEN, HIDDEN), lambda i: (0, 0, 0)),
                pl.BlockSpec((action_size, HIDDEN), lambda i: (0, 0)),
                pl.BlockSpec((max_out, 4), lambda i: (0, 0)),
            ],
            out_specs=pl.BlockSpec((action_size, tb), lambda i: (0, i)),
        ),
        compiler_params=pltpu.CompilerParams(
            dimension_semantics=("parallel",),   # v7x: 2 TCs split batch blocks
            vmem_limit_bytes=32 * 1024 * 1024,   # safe on v5e/v6e/v7x
        ),
    )(x, packed["w1"], packed["w23"], packed["w4"], packed["b"])

    return out_t.T  # [batch, action_size]


def init_params(key, state_size, action_size):
    """PyTorch nn.Linear-style init: W [out, in], b [out], U(-1/sqrt(fan_in), +)."""
    dims = [(state_size, HIDDEN), (HIDDEN, HIDDEN), (HIDDEN, HIDDEN),
            (HIDDEN, action_size)]
    params = {}
    for i, (fan_in, fan_out) in enumerate(dims, start=1):
        key, kw, kb = jax.random.split(key, 3)
        bound = 1.0 / jnp.sqrt(float(fan_in))
        params[f"w{i}"] = jax.random.uniform(
            kw, (fan_out, fan_in), jnp.float32, -bound, bound)
        params[f"b{i}"] = jax.random.uniform(
            kb, (fan_out,), jnp.float32, -bound, bound)
    return params


def reference_forward(x, params):
    h = jnp.maximum(x @ params["w1"].T + params["b1"], None) if False else None
    # plain JAX reference (matches the PyTorch forward)
    def leaky(v):
        return jnp.where(v >= 0, v, NEG_SLOPE * v)
    h = leaky(x @ params["w1"].T + params["b1"])
    h = leaky(h @ params["w2"].T + params["b2"])
    h = leaky(h @ params["w3"].T + params["b3"])
    return h @ params["w4"].T + params["b4"]


if __name__ == "__main__":
    state_size, action_size = 16, 4

    key = jax.random.PRNGKey(0)
    key, kp = jax.random.split(key)
    params = init_params(kp, state_size, action_size)
    packed = pack_params(params)

    # 1) Small problem (single grid step, block == full batch).
    key, kx = jax.random.split(key)
    x_small = jax.random.normal(kx, (8, state_size), dtype=jnp.float32)
    out_small = jax.block_until_ready(mlp_forward(x_small, packed))
    ref_small = reference_forward(x_small, params)
    assert out_small.shape == (8, action_size)
    assert jnp.allclose(out_small, ref_small, atol=1e-4, rtol=1e-4), \
        "small-batch mismatch vs reference"

    # 2) Larger single-block batch.
    key, kx2 = jax.random.split(key)
    x_big = jax.random.normal(kx2, (640, state_size), dtype=jnp.float32)
    out_big = jax.block_until_ready(mlp_forward(x_big, packed))
    ref_big = reference_forward(x_big, params)
    assert out_big.shape == (640, action_size)
    assert jnp.allclose(out_big, ref_big, atol=1e-4, rtol=1e-4), \
        "large-batch mismatch vs reference"

    # 3) Multi-block grid with a ragged tail (exercises resident weights,
    #    boundary masking, no host-side padding/transpose of x).
    key, kx3 = jax.random.split(key)
    x_rag = jax.random.normal(kx3, (4000, state_size), dtype=jnp.float32)
    out_rag = jax.block_until_ready(mlp_forward(x_rag, packed, block_batch=512))
    ref_rag = reference_forward(x_rag, params)
    assert out_rag.shape == (4000, action_size)
    assert jnp.allclose(out_rag, ref_rag, atol=1e-4, rtol=1e-4), \
        "ragged multi-block mismatch vs reference"

    print("KERNEL_OK")
</pallas_src>

<mosaic_0001>
module attributes {stable_mosaic.version = 11 : i64} {
  func.func @_mlp_kernel(%arg0: i32, %arg1: memref<8x16xf32, #tpu.memory_space<vmem>>, %arg2: memref<20x16xf32, #tpu.memory_space<vmem>>, %arg3: memref<2x20x20xf32, #tpu.memory_space<vmem>>, %arg4: memref<4x20xf32, #tpu.memory_space<vmem>>, %arg5: memref<20x4xf32, #tpu.memory_space<vmem>>, %arg6: memref<4x8xf32, #tpu.memory_space<vmem>>) attributes {dimension_semantics = [#tpu.dimension_semantics<parallel>], iteration_bounds = array<i64: 1>, scalar_prefetch = 0 : i64, scratch_operands = 0 : i64, tpu.core_type = #tpu.core_type<tc>, window_params = [{transform_indices = @transform_0, window_bounds = array<i64: 8, 16>}, {pipeline_mode = #tpu.pipeline_mode<synchronous>, transform_indices = @transform_1, window_bounds = array<i64: 20, 16>}, {pipeline_mode = #tpu.pipeline_mode<synchronous>, transform_indices = @transform_2, window_bounds = array<i64: 2, 20, 20>}, {pipeline_mode = #tpu.pipeline_mode<synchronous>, transform_indices = @transform_3, window_bounds = array<i64: 4, 20>}, {pipeline_mode = #tpu.pipeline_mode<synchronous>, transform_indices = @transform_4, window_bounds = array<i64: 20, 4>}, {transform_indices = @transform_5, window_bounds = array<i64: 4, 8>}]} {
    %c0 = arith.constant 0 : index
    %c0_0 = arith.constant 0 : index
    %0 = vector.load %arg1[%c0, %c0_0] : memref<8x16xf32, #tpu.memory_space<vmem>>, vector<8x16xf32>
    %c0_1 = arith.constant 0 : index
    %c0_2 = arith.constant 0 : index
    %1 = vector.load %arg2[%c0_1, %c0_2] : memref<20x16xf32, #tpu.memory_space<vmem>>, vector<20x16xf32>
    %c0_3 = arith.constant 0 : index
    %c0_4 = arith.constant 0 : index
    %c0_5 = arith.constant 0 : index
    %2 = vector.load %arg3[%c0_3, %c0_4, %c0_5] : memref<2x20x20xf32, #tpu.memory_space<vmem>>, vector<1x20x20xf32>
    %3 = vector.shape_cast %2 : vector<1x20x20xf32> to vector<20x20xf32>
    %c1 = arith.constant 1 : index
    %c0_6 = arith.constant 0 : index
    %c0_7 = arith.constant 0 : index
    %4 = vector.load %arg3[%c1, %c0_6, %c0_7] : memref<2x20x20xf32, #tpu.memory_space<vmem>>, vector<1x20x20xf32>
    %5 = vector.shape_cast %4 : vector<1x20x20xf32> to vector<20x20xf32>
    %c0_8 = arith.constant 0 : index
    %c0_9 = arith.constant 0 : index
    %6 = vector.load %arg4[%c0_8, %c0_9] : memref<4x20xf32, #tpu.memory_space<vmem>>, vector<4x20xf32>
    %c0_10 = arith.constant 0 : index
    %c0_11 = arith.constant 0 : index
    %7 = vector.load %arg5[%c0_10, %c0_11] : memref<20x4xf32, #tpu.memory_space<vmem>>, vector<20x1xf32>
    %c0_12 = arith.constant 0 : index
    %c1_13 = arith.constant 1 : index
    %8 = vector.load %arg5[%c0_12, %c1_13] : memref<20x4xf32, #tpu.memory_space<vmem>>, vector<20x1xf32>
    %c0_14 = arith.constant 0 : index
    %c2 = arith.constant 2 : index
    %9 = vector.load %arg5[%c0_14, %c2] : memref<20x4xf32, #tpu.memory_space<vmem>>, vector<20x1xf32>
    %c0_15 = arith.constant 0 : index
    %c3 = arith.constant 3 : index
    %10 = vector.load %arg5[%c0_15, %c3] : memref<20x4xf32, #tpu.memory_space<vmem>>, vector<4x1xf32>
    %cst = arith.constant dense<0.000000e+00> : vector<20x8xf32>
    %11 = tpu.matmul %1, %0, %cst {dimension_numbers = #tpu.dot_dimension_numbers<[1], [1], [0], [0], [0, 0, 1, 0], [], []>} : vector<20x16xf32>, vector<8x16xf32>, vector<20x8xf32> -> vector<20x8xf32>
    %12 = vector.broadcast %7 : vector<20x1xf32> to vector<20x8xf32>
    %13 = arith.addf %11, %12 : vector<20x8xf32>
    %cst_16 = arith.constant 1.000000e-01 : f32
    %14 = vector.broadcast %cst_16 : f32 to vector<20x8xf32>
    %15 = arith.mulf %14, %13 : vector<20x8xf32>
    %16 = arith.maximumf %13, %15 : vector<20x8xf32>
    %cst_17 = arith.constant dense<0.000000e+00> : vector<20x8xf32>
    %17 = tpu.matmul %3, %16, %cst_17 {dimension_numbers = #tpu.dot_dimension_numbers<[1], [0], [0], [1], [0, 0, 1, 1], [], []>} : vector<20x20xf32>, vector<20x8xf32>, vector<20x8xf32> -> vector<20x8xf32>
    %18 = vector.broadcast %8 : vector<20x1xf32> to vector<20x8xf32>
    %19 = arith.addf %17, %18 : vector<20x8xf32>
    %cst_18 = arith.constant 1.000000e-01 : f32
    %20 = vector.broadcast %cst_18 : f32 to vector<20x8xf32>
    %21 = arith.mulf %20, %19 : vector<20x8xf32>
    %22 = arith.maximumf %19, %21 : vector<20x8xf32>
    %cst_19 = arith.constant dense<0.000000e+00> : vector<20x8xf32>
    %23 = tpu.matmul %5, %22, %cst_19 {dimension_numbers = #tpu.dot_dimension_numbers<[1], [0], [0], [1], [0, 0, 1, 1], [], []>} : vector<20x20xf32>, vector<20x8xf32>, vector<20x8xf32> -> vector<20x8xf32>
    %24 = vector.broadcast %9 : vector<20x1xf32> to vector<20x8xf32>
    %25 = arith.addf %23, %24 : vector<20x8xf32>
    %cst_20 = arith.constant 1.000000e-01 : f32
    %26 = vector.broadcast %cst_20 : f32 to vector<20x8xf32>
    %27 = arith.mulf %26, %25 : vector<20x8xf32>
    %28 = arith.maximumf %25, %27 : vector<20x8xf32>
    %cst_21 = arith.constant dense<0.000000e+00> : vector<4x8xf32>
    %29 = tpu.matmul %6, %28, %cst_21 {dimension_numbers = #tpu.dot_dimension_numbers<[1], [0], [0], [1], [0, 0, 1, 1], [], []>} : vector<4x20xf32>, vector<20x8xf32>, vector<4x8xf32> -> vector<4x8xf32>
    %30 = vector.broadcast %10 : vector<4x1xf32> to vector<4x8xf32>
    %31 = arith.addf %29, %30 : vector<4x8xf32>
    %c0_22 = arith.constant 0 : index
    %c0_23 = arith.constant 0 : index
    %32 = vector.load %arg6[%c0_22, %c0_23] : memref<4x8xf32, #tpu.memory_space<vmem>>, vector<4x8xf32>
    tpu.vector_store %arg6[%c0_22, %c0_23], %31 {strides = array<i32>} : memref<4x8xf32, #tpu.memory_space<vmem>>, vector<4x8xf32>,
    return
  }
  func.func @transform_0(%arg0: i32) -> (i32, i32) {
    %c0_i32 = arith.constant 0 : i32
    %c0_i32_0 = arith.constant 0 : i32
    return %arg0, %c0_i32 : i32, i32
  }
  func.func @transform_1(%arg0: i32) -> (i32, i32) {
    %c0_i32 = arith.constant 0 : i32
    %c0_i32_0 = arith.constant 0 : i32
    %c0_i32_1 = arith.constant 0 : i32
    return %c0_i32, %c0_i32_0 : i32, i32
  }
  func.func @transform_2(%arg0: i32) -> (i32, i32, i32) {
    %c0_i32 = arith.constant 0 : i32
    %c0_i32_0 = arith.constant 0 : i32
    %c0_i32_1 = arith.constant 0 : i32
    %c0_i32_2 = arith.constant 0 : i32
    return %c0_i32, %c0_i32_0, %c0_i32_1 : i32, i32, i32
  }
  func.func @transform_3(%arg0: i32) -> (i32, i32) {
    %c0_i32 = arith.constant 0 : i32
    %c0_i32_0 = arith.constant 0 : i32
    %c0_i32_1 = arith.constant 0 : i32
    return %c0_i32, %c0_i32_0 : i32, i32
  }
  func.func @transform_4(%arg0: i32) -> (i32, i32) {
    %c0_i32 = arith.constant 0 : i32
    %c0_i32_0 = arith.constant 0 : i32
    %c0_i32_1 = arith.constant 0 : i32
    return %c0_i32, %c0_i32_0 : i32, i32
  }
  func.func @transform_5(%arg0: i32) -> (i32, i32) {
    %c0_i32 = arith.constant 0 : i32
    %c0_i32_0 = arith.constant 0 : i32
    return %c0_i32, %arg0 : i32, i32
  }
}

</mosaic_0001>

<bundles_post_ra>
// kernel: mlp_forward.1
= control target key start
LH: loop header
LB: loop body
LE: loop exit
PB: predicated region body
PF: predicated region fallthrough
CT: control target
= control target key end

     0   :  { %vm52_vm0 = vcmask 130048   ;;  %v608_v1 = vmov 0.0   ;;  %vm609_vm1 = vmmov 0   ;;  %s748_s0 = inlined_call_operand.vmem [shape: f32[8,16], index: 0, kind: input, shape index: {}]   ;;  %s749_s1 = inlined_call_operand.vmem [shape: f32[20,16], index: 1, kind: input, shape index: {}]   ;;  %s750_s2 = inlined_call_operand.vmem [shape: f32[2,20,20], index: 2, kind: input, shape index: {}]   ;;  %s751_s3 = inlined_call_operand.vmem [shape: f32[4,20], index: 3, kind: input, shape index: {}]   ;;  %s752_s4 = inlined_call_operand.vmem [shape: f32[20,4], index: 4, kind: input, shape index: {}]   ;;  %s753_s5 = inlined_call_operand.hbm [shape: f32[4,8], index: 5, kind: output, shape index: {}]  }
   0x1   :  { %v21_v0 = vld [vmem:[%s748_s0] sm:$0xff]  ;;  %507 = vmatprep.subr.mxu0 %v608_v1  ;;  %509 = vmatprep.mubr.msk.f32.mxu0 %vm609_vm1, %v608_v1 }
   0x2   :  { %508 = vmatpush3.xpose.msk.msra.mxu0 %vm52_vm0, %v21_v0  ;;  %v22_v2 = vld [vmem:[%s749_s1] sm:$0xff]  ;;  %566 = vmatprep.subr.mxu1 %v608_v1 }
   0x3   :  { %v660_v3 = vld [vmem:[%s752_s4] sm:$0xff] }
   0x4   :  { %10 = vsyncpa [#allocation3], 0  ;;  %567 = vmatpush3.xpose.msk.msra.mxu1 %vm52_vm0, %v21_v0  ;;  %515 = vmatprep.mubr.msk.f32.mxu1 %vm609_vm1, %v608_v1  ;;  %v24_v4 = vld [vmem:[%s749_s1 + $0x10] sm:$0xf]  ;;  %v610_v5 = vmov 0   ;;  %v23_v7 = vld [vmem:[%s749_s1 + $0x8] sm:$0xff] }
   0x5   :  { %576 = vset.pattern.permute.xlu0 %v610_v5  ;;  %577 = vset.pattern.permute.xlu1 %v610_v5  ;;  %v35_v6 = vld [vmem:[%s752_s4 + $0x10] sm:$0xf]  ;;  %v34_v8 = vld [vmem:[%s752_s4 + $0x8] sm:$0xff]  ;;  %v611_v9 = vmov 0.0|0.0   ;;  %v612_v10 = vmov 1   ;;  %vm173_vm2 = vcmask 1043456  }
   0x6   :  { %510 = vmatmul.mubr.msk.f32.vlgmr.msra.gmra.mrb[0].mxu0 %vm52_vm0, %v22_v2  ;;  %39 = vperm.xlu0 %576, %v660_v3   ;;  %v25_v30 = vld [vmem:[%s750_s2] sm:$0xff]  ;;  %vm163_vm3 = vcmask 162816   ;;  %v26_v31 = vld [vmem:[%s750_s2 + $0x8] sm:$0xff]  ;;  %v27_v32 = vld [vmem:[%s750_s2 + $0x10] sm:$0xf]  ;;  %v613_v33 = vmov 2  }
   0x7   :  { %512 = vmatprep.mubr.msk.f32.mxu0 %vm609_vm1, %v608_v1  ;;  %516 = vmatmul.mubr.msk.f32.vlgmr.msra.gmra.mrb[0].mxu1 %vm52_vm0, %v24_v4  ;;  %v470_v53 = vld [vmem:[%s750_s2 + $0x18] sm:$0xff]  ;;  %v471_v54 = vld [vmem:[%s750_s2 + $0x20] sm:$0xff]  ;;  %v472_v55 = vld [vmem:[%s750_s2 + $0x28] sm:$0xf]  ;;  %v614_v57 = vmov 3   ;;  %s615_s19 = smov [#allocation2]  }
   0x8   :  { %49 = vperm.xlu1 %577, %v35_v6   ;;  %524 = vmatprep.mubr.msk.f32.mxu1 %vm609_vm1, %v608_v1  ;;  %v36_v56 = vld [vmem:[%s752_s4] sm:$0xf]  ;;  %s462_s20 = sshll.u32 %s615_s19, 4  ;;  %vm454_vm4 = vcmask 60416   ;;  %s463_s20 = int_to_ptr.vmem [resolvable:$true] %s462_s20 }
   0x9   :  { %557 = vmatprep.subr.bf16.mxu1 %v611_v9  ;;  %560 = vmatprep.subr.bf16.mxu0 %v611_v9  ;;  %s584_s21 = scalar_lea.vmem %s463_s20, 64  ;;  %p589_p1 = scmp.lt.s32.totalorder %s463_s20, %s463_s20 }
   0xa   :  { %513 = vmatmul.mubr.msk.f32.gmra.mrb[2].mxu0 %vm52_vm0, %v23_v7  ;;  %44 = vperm.xlu0 %576, %v34_v8   ;;  %p585_p0 = scmp.ne.s32.totalorder %s463_s20, %s584_s21  ;;  %p590_p2 = scmp.lt.s32.totalorder %s584_s21, %s584_s21 }
   0xb   :  { %539 = vmatprep.mubr.msk.f32.mxu0 %vm609_vm1, %v608_v1 }
   0xc   :  { %578 = vset.pattern.permute.xlu1 %v612_v10  ;;  %p591_p3 = por %p590_p2, %p589_p1 }
   0xd   :  { %152 = vperm.xlu1 %578, %v660_v3  }
   0xe   :  { %579 = vset.pattern.permute.xlu0 %v612_v10  ;;  %p592_p4 = pnand %p591_p3, %p585_p0 }
   0xf   :  { %156 = vperm.xlu0 %579, %v34_v8  }
  0x11   :  { %160 = vperm.xlu1 %578, %v35_v6  }
  0x13   :  { %581 = vset.pattern.permute.xlu0 %v613_v33 }
  0x14   :  { %268 = vperm.xlu0 %581, %v34_v8  }
  0x15   :  { %580 = vset.pattern.permute.xlu1 %v613_v33 }
  0x16   :  { %264 = vperm.xlu1 %580, %v660_v3  }
  0x18   :  { %583 = vset.pattern.permute.xlu0 %v614_v57 }
  0x1a   :  { %272 = vperm.xlu1 %580, %v35_v6  }
  0x1e   :  { %582 = vset.pattern.permute.xlu1 %v614_v57 }
  0x1f   :  { %375 = vperm.xlu1 %582, %v36_v56  }
  0x85   :  { %v40_v11 = vpop.permute.xlu0 %39 }
  0x87   :  { %v50_v17 = vpop.permute.xlu1 %49 }
  0x89   :  { %v45_v18 = vpop.permute.xlu0 %44 }
  0x8c   :  { %v153_v34 = vpop.permute.xlu1 %152 }
  0x8e   :  { %v157_v38 = vpop.permute.xlu0 %156 }
  0x90   :  { %v161_v44 = vpop.permute.xlu1 %160 }
  0x93   :  { %v269_v62 = vpop.permute.xlu0 %268 }
  0x95   :  { %v265_v58 = vpop.permute.xlu1 %264 }
  0x99   :  { %v273_v5 = vpop.permute.xlu1 %272 }
  0xd9   :  { %v131_v12 = vpop.f32.mrb[0].mxu0 }
  0xda   :  { %v132_v13 = vadd.f32 %v131_v12, %v40_v11  ;;  %v511_v14 = vpop.f32.mrb[1].mxu0  ;;  %v141_v15 = vpop.f32.mrb[0].mxu1 }
  0xdb   :  { %v517_v16 = vpop.f32.mrb[1].mxu1  ;;  %v142_v24 = vadd.f32 %v141_v15, %v50_v17  ;;  %v32_v14 = vld [vmem:[%s751_s3] sm:$0xf]  ;;  %v376_v15 = vpop.permute.xlu1 %375 }
  0xdc   :  { %v145_v20 = vmul.f32 0.1, %v132_v13 }
  0xdd   :  { %v136_v19 = vpop.f32.mrb[2].mxu0  ;;  %v147_v28 = vmul.f32 0.1, %v142_v24 }
  0xde   :  { %v137_v21 = vadd.f32 %v136_v19, %v45_v18  ;;  %v514_v22 = vpop.f32.mrb[3].mxu0  ;;  %v148_v25 = vmax.f32 %v132_v13, %v145_v20 }
  0xdf   :  { %v150_v29 = vmax.f32 %v142_v24, %v147_v28 }
  0xe0   :  { %v146_v23 = vmul.f32 0.1, %v137_v21 }
  0xe2   :  { %v149_v26 = vmax.f32 %v137_v21, %v146_v23 }
  0xe4   :  { %v558_v27 = vpack.c.bf16 %v149_v26, %v148_v25 }
  0xe6   :  { %559 = vmatpush3.bf16.msra.mxu1 %v558_v27 }
  0xe7   :  { %522 = vmatprep.subr.mxu1 %v608_v1 }
  0xea   :  { %523 = vmatpush3.msk.msra.mxu1 %vm173_vm2, %v150_v29 }
  0xeb   :  { %525 = vmatmul.mubr.msk.f32.vlgmr.msra.gmra.mrb[2].mxu1 %vm163_vm3, %v25_v30  ;;  %563 = vmatprep.subr.bf16.mxu1 %v611_v9 }
  0xec   :  { %527 = vmatprep.mubr.msk.f32.mxu1 %vm609_vm1, %v608_v1 }
  0xef   :  { %528 = vmatmul.mubr.msk.f32.gmra.mrb[4].mxu1 %vm163_vm3, %v26_v31 }
  0xf0   :  { %530 = vmatprep.mubr.msk.f32.mxu1 %vm609_vm1, %v608_v1 }
  0xf3   :  { %531 = vmatmul.mubr.msk.f32.gmra.mrb[6].mxu1 %vm163_vm3, %v27_v32 }
  0xf4   :  { %554 = vmatprep.mubr.msk.f32.mxu1 %vm609_vm1, %v608_v1 }
 0x1be   :  { %v243_v35 = vpop.f32.mrb[2].mxu1 }
 0x1bf   :  { %v244_v36 = vadd.f32 %v243_v35, %v153_v34  ;;  %v526_v37 = vpop.f32.mrb[3].mxu1 }
 0x1c1   :  { %v257_v40 = vmul.f32 0.1, %v244_v36 }
 0x1c2   :  { %v248_v39 = vpop.f32.mrb[4].mxu1 }
 0x1c3   :  { %v249_v41 = vadd.f32 %v248_v39, %v157_v38  ;;  %v529_v42 = vpop.f32.mrb[5].mxu1  ;;  %v260_v46 = vmax.f32 %v244_v36, %v257_v40 }
 0x1c5   :  { %v258_v43 = vmul.f32 0.1, %v249_v41 }
 0x1c6   :  { %v253_v45 = vpop.f32.mrb[6].mxu1 }
 0x1c7   :  { %v261_v47 = vmax.f32 %v249_v41, %v258_v43  ;;  %v254_v48 = vadd.f32 %v253_v45, %v161_v44  ;;  %v532_v49 = vpop.f32.mrb[7].mxu1 }
 0x1c9   :  { %v561_v50 = vpack.c.bf16 %v261_v47, %v260_v46  ;;  %v259_v51 = vmul.f32 0.1, %v254_v48 }
 0x1cb   :  { %562 = vmatpush3.bf16.msra.mxu0 %v561_v50  ;;  %v262_v52 = vmax.f32 %v254_v48, %v259_v51 }
 0x1cc   :  { %537 = vmatprep.subr.mxu0 %v608_v1 }
 0x1cf   :  { %538 = vmatpush3.msk.msra.mxu0 %vm173_vm2, %v262_v52 }
 0x1d0   :  { %540 = vmatmul.mubr.msk.f32.vlgmr.msra.gmra.mrb[4].mxu0 %vm163_vm3, %v470_v53 }
 0x1d1   :  { %542 = vmatprep.mubr.msk.f32.mxu0 %vm609_vm1, %v608_v1 }
 0x1d4   :  { %543 = vmatmul.mubr.msk.f32.gmra.mrb[6].mxu0 %vm163_vm3, %v471_v54 }
 0x1d5   :  { %545 = vmatprep.mubr.msk.f32.mxu0 %vm609_vm1, %v608_v1 }
 0x1d8   :  { %546 = vmatmul.mubr.msk.f32.gmra.mrb[8].mxu0 %vm163_vm3, %v472_v55 }
 0x2a3   :  { %v353_v59 = vpop.f32.mrb[4].mxu0 }
 0x2a4   :  { %v354_v60 = vadd.f32 %v353_v59, %v265_v58  ;;  %v541_v61 = vpop.f32.mrb[5].mxu0 }
 0x2a6   :  { %v367_v0 = vmul.f32 0.1, %v354_v60 }
 0x2a7   :  { %v358_v63 = vpop.f32.mrb[6].mxu0 }
 0x2a8   :  { %v359_v2 = vadd.f32 %v358_v63, %v269_v62  ;;  %v544_v3 = vpop.f32.mrb[7].mxu0  ;;  %v370_v7 = vmax.f32 %v354_v60, %v367_v0 }
 0x2aa   :  { %v368_v4 = vmul.f32 0.1, %v359_v2 }
 0x2ab   :  { %v363_v6 = vpop.f32.mrb[8].mxu0 }
 0x2ac   :  { %v371_v8 = vmax.f32 %v359_v2, %v368_v4  ;;  %v364_v9 = vadd.f32 %v363_v6, %v273_v5  ;;  %v547_v10 = vpop.f32.mrb[9].mxu0 }
 0x2ae   :  { %v564_v11 = vpack.c.bf16 %v371_v8, %v370_v7  ;;  %v369_v12 = vmul.f32 0.1, %v364_v9 }
 0x2b0   :  { %565 = vmatpush3.bf16.msra.mxu1 %v564_v11  ;;  %v372_v13 = vmax.f32 %v364_v9, %v369_v12 }
 0x2b1   :  { %552 = vmatprep.subr.mxu1 %v608_v1 }
 0x2b4   :  { %553 = vmatpush3.msk.msra.mxu1 %vm173_vm2, %v372_v13 }
 0x2b5   :  { %555 = vmatmul.mubr.msk.f32.vlgmr.msra.gmra.mrb[8].mxu1 %vm163_vm3, %v32_v14 }
 0x388   :  { %v450_v16 = vpop.f32.mrb[8].mxu1 }
 0x389   :  { %v451_v17 = vadd.f32 %v450_v16, %v376_v15  ;;  %v556_v18 = vpop.f32.mrb[9].mxu1 }
 0x38b   :  { %455 = vst.msk [vmem:[#allocation2] sm:$0xf] %vm454_vm4, %v451_v17 }
 0x38c   :  { %595 = shalt.err (!%p592_p4)
}
 0x38d   :  { %s596_s23 = scalar_lea.hbm %s753_s5, 64 }
 0x38e   :  { %p597_p5 = scmp.ne.s32.totalorder %s753_s5, %s596_s23  ;;  %p600_p6 = scmp.lt.u32.totalorder %s596_s23, %s753_s5 }
 0x390   :  { %p602_p7 = pnand %p600_p6, %p597_p5 }
 0x392   :  { %605 = shalt.err (!%p602_p7)
}
 0x393   :  { %465 = dma.vmem_to_hbm [thread:$0]  %s463_s20, 64, %s753_s5, [#allocation3]  }
 0x394   :  { %606 = dma.done.wait [#allocation3], 64  }
 0x395   :  { %607 = vsyncadd [#allocation3], 4294967232 }
 0x396   :  { %469 = vsyncpa [#allocation3], 1 }

</bundles_post_ra>
